<compile_context>
chip_gen: v6e
topology: v6e:2x2x1
jax: 0.10.0
libtpu: 0.0.40
codegen_flags: <defaults>
</compile_context>

<pallas_src>
import jax
import jax.numpy as jnp
from jax.experimental import pallas as pl
from jax.experimental.pallas import tpu as pltpu


def _mean_pooler_kernel(mask_ref, h_ref, w1_ref, b1_ref, w2_ref, b2_ref, out_ref):
    # mask_ref: (Bb, S, L) bf16, h_ref: (Bb, L, H) bf16,
    # w*_ref: (H, H) bf16 (pre-transposed so kernel does x @ W),
    # b*_ref: (1, H) f32, out_ref: (Bb, S, H) f32.
    m = mask_ref[...]
    h = h_ref[...]

    # sentence_sums = mask @ hidden  (bf16 operands, f32 MXU accumulation)
    sums = jnp.einsum("bsl,blh->bsh", m, h,
                      preferred_element_type=jnp.float32)            # (Bb, S, H)

    # divisor = sqrt(clamp(mask.sum(-1), 1))  ->  multiply by rsqrt (EUP slot)
    cnt = jnp.sum(m.astype(jnp.float32), axis=-1, keepdims=True)     # (Bb, S, 1)
    sums = sums * jax.lax.rsqrt(jnp.maximum(cnt, 1.0))

    bb, s, hdim = sums.shape
    x = sums.reshape(bb * s, hdim)                                    # fat-M slab

    # dense1 -> relu -> (dropout: identity in eval) -> dense2
    x = jnp.dot(x.astype(jnp.bfloat16), w1_ref[...],
                preferred_element_type=jnp.float32) + b1_ref[...]
    x = jnp.maximum(x, 0.0)
    y = jnp.dot(x.astype(jnp.bfloat16), w2_ref[...],
                preferred_element_type=jnp.float32) + b2_ref[...]

    out_ref[...] = y.reshape(bb, s, hdim).astype(out_ref.dtype)


def _pick_block_batch(B, S, L, H, *, budget_bytes=20 * 1024 * 1024):
    """Largest divisor Bb of B whose double-buffered working set fits the budget."""
    best = 1
    for bb in range(1, B + 1):
        if B % bb:
            continue
        # 2x double-buffered bf16 mask/hidden blocks + 2x f32 output block
        blocks = 2 * bb * (S * L + L * H) * 2 + 2 * bb * S * H * 4
        # weights/biases (conservatively assume double-buffered, bf16 W / f32 b)
        weights = 2 * (2 * H * H * 2 + 2 * H * 4)
        if blocks + weights <= budget_bytes:
            best = bb
        if bb * S >= 512:  # already plenty of MXU rows; stop growing the block
            break
    return best


def mean_pooler_forward(hidden_states, mask, w1, b1, w2, b2, sqrt=True):
    """hidden_states: [B, L_full, H]; mask: [B, S, L] (0/1 values).
    w1, w2: [H, H] PyTorch-style (out, in); b1, b2: [H]. Returns [B, S, H] f32."""
    assert sqrt, "only the sqrt=True path is implemented in this kernel"
    B, S, L = mask.shape
    B_h, L_full, H = hidden_states.shape
    assert B_h == B and L <= L_full

    # bf16 inputs; the kernel accumulates in f32 on the MXU.
    mask_bf = jnp.asarray(mask, jnp.bfloat16)
    hidden_bf = jnp.asarray(hidden_states, jnp.bfloat16)
    w1_t = jnp.asarray(w1, jnp.bfloat16).T           # (H_in, H_out): kernel does x @ W
    w2_t = jnp.asarray(w2, jnp.bfloat16).T
    b1_r = jnp.asarray(b1, jnp.float32).reshape(1, H)
    b2_r = jnp.asarray(b2, jnp.float32).reshape(1, H)

    # hidden_states[:, :L] is expressed as a BlockSpec window into the full
    # array (no HBM copy). Rare fallback if the (8,128) block rule forbids it.
    if L != L_full and L % 8 != 0:
        hidden_bf = hidden_bf[:, :L, :]

    Bb = _pick_block_batch(B, S, L, H)
    grid = (B // Bb,)

    grid_spec = pltpu.PrefetchScalarGridSpec(
        num_scalar_prefetch=0,
        grid=grid,
        in_specs=[
            pl.BlockSpec((Bb, S, L), lambda b: (b, 0, 0)),   # mask
            pl.BlockSpec((Bb, L, H), lambda b: (b, 0, 0)),   # hidden window [:, :L, :]
            pl.BlockSpec((H, H), lambda b: (0, 0)),          # w1 (pre-transposed)
            pl.BlockSpec((1, H), lambda b: (0, 0)),          # b1
            pl.BlockSpec((H, H), lambda b: (0, 0)),          # w2 (pre-transposed)
            pl.BlockSpec((1, H), lambda b: (0, 0)),          # b2
        ],
        out_specs=pl.BlockSpec((Bb, S, H), lambda b: (b, 0, 0)),
    )

    return pl.pallas_call(
        _mean_pooler_kernel,
        out_shape=jax.ShapeDtypeStruct((B, S, H), jnp.float32),
        grid_spec=grid_spec,
        compiler_params=pltpu.CompilerParams(
            dimension_semantics=("parallel",)),
    )(mask_bf, hidden_bf, w1_t, b1_r, w2_t, b2_r)


def _reference(hidden_states, mask, w1, b1, w2, b2):
    """Pure-JAX reference following the same bf16-input / f32-accumulate path."""
    L = mask.shape[2]
    h = jnp.asarray(hidden_states[:, :L, :], jnp.bfloat16).astype(jnp.float32)
    m = jnp.asarray(mask, jnp.bfloat16).astype(jnp.float32)
    w1b = jnp.asarray(w1, jnp.bfloat16).astype(jnp.float32)
    w2b = jnp.asarray(w2, jnp.bfloat16).astype(jnp.float32)

    sums = jnp.einsum("bsl,blh->bsh", m, h)
    div = jnp.sqrt(jnp.maximum(jnp.sum(m, axis=2, keepdims=True), 1.0))
    sums = sums / div

    x = sums.astype(jnp.bfloat16).astype(jnp.float32)
    x = jnp.maximum(jnp.einsum("bsh,hk->bsk", x, w1b.T) + b1, 0.0)
    x = x.astype(jnp.bfloat16).astype(jnp.float32)
    return jnp.einsum("bsh,hk->bsk", x, w2b.T) + b2


if __name__ == "__main__":
    key = jax.random.PRNGKey(0)
    B, S, L, L_full, H = 2, 4, 8, 16, 32   # L < L_full exercises the BlockSpec window

    k1, k2, k3, k4, k5, k6 = jax.random.split(key, 6)
    hidden_states = jax.random.normal(k1, (B, L_full, H), dtype=jnp.float32)
    mask = (jax.random.uniform(k2, (B, S, L)) > 0.5).astype(jnp.float32)

    # PyTorch-style Linear params: weight (out, in), bias (out,)
    bound = 1.0 / (H ** 0.5)
    w1 = jax.random.uniform(k3, (H, H), minval=-bound, maxval=bound, dtype=jnp.float32)
    b1 = jax.random.uniform(k4, (H,), minval=-bound, maxval=bound, dtype=jnp.float32)
    w2 = jax.random.uniform(k5, (H, H), minval=-bound, maxval=bound, dtype=jnp.float32)
    b2 = jax.random.uniform(k6, (H,), minval=-bound, maxval=bound, dtype=jnp.float32)

    out = mean_pooler_forward(hidden_states, mask, w1, b1, w2, b2, sqrt=True)
    out = jax.block_until_ready(out)

    ref = _reference(hidden_states, mask, w1, b1, w2, b2)
    assert out.shape == (B, S, H)
    assert jnp.allclose(out, ref, atol=2e-2, rtol=2e-2), float(jnp.max(jnp.abs(out - ref)))
    print("KERNEL_OK")
</pallas_src>

<mosaic_0001>
module attributes {stable_mosaic.version = 11 : i64} {
  func.func @_mean_pooler_kernel(%arg0: i32, %arg1: memref<2x4x8xbf16, #tpu.memory_space<vmem>>, %arg2: memref<2x8x32xbf16, #tpu.memory_space<vmem>>, %arg3: memref<32x32xbf16, #tpu.memory_space<vmem>>, %arg4: memref<1x32xf32, #tpu.memory_space<vmem>>, %arg5: memref<32x32xbf16, #tpu.memory_space<vmem>>, %arg6: memref<1x32xf32, #tpu.memory_space<vmem>>, %arg7: memref<2x4x32xf32, #tpu.memory_space<vmem>>) attributes {dimension_semantics = [#tpu.dimension_semantics<parallel>], iteration_bounds = array<i64: 1>, scalar_prefetch = 0 : i64, scratch_operands = 0 : i64, tpu.core_type = #tpu.core_type<tc>, window_params = [{transform_indices = @transform_0, window_bounds = array<i64: 2, 4, 8>}, {transform_indices = @transform_1, window_bounds = array<i64: 2, 8, 32>}, {pipeline_mode = #tpu.pipeline_mode<synchronous>, transform_indices = @transform_2, window_bounds = array<i64: 32, 32>}, {pipeline_mode = #tpu.pipeline_mode<synchronous>, transform_indices = @transform_3, window_bounds = array<i64: 1, 32>}, {pipeline_mode = #tpu.pipeline_mode<synchronous>, transform_indices = @transform_4, window_bounds = array<i64: 32, 32>}, {pipeline_mode = #tpu.pipeline_mode<synchronous>, transform_indices = @transform_5, window_bounds = array<i64: 1, 32>}, {transform_indices = @transform_6, window_bounds = array<i64: 2, 4, 32>}]} {
    %c0 = arith.constant 0 : index
    %c0_0 = arith.constant 0 : index
    %c0_1 = arith.constant 0 : index
    %0 = vector.load %arg1[%c0, %c0_0, %c0_1] : memref<2x4x8xbf16, #tpu.memory_space<vmem>>, vector<2x4x8xbf16>
    %c0_2 = arith.constant 0 : index
    %c0_3 = arith.constant 0 : index
    %c0_4 = arith.constant 0 : index
    %1 = vector.load %arg2[%c0_2, %c0_3, %c0_4] : memref<2x8x32xbf16, #tpu.memory_space<vmem>>, vector<2x8x32xbf16>
    "tpu.trace_start"() <{level = 10 : i32, message = "bsl,blh->bsh"}> : () -> ()
    %cst = arith.constant dense<0.000000e+00> : vector<2x4x32xf32>
    %2 = tpu.matmul %0, %1, %cst {dimension_numbers = #tpu.dot_dimension_numbers<[2], [1], [1], [2], [0, 0, 0, 1, 1, 2], [0], [0]>} : vector<2x4x8xbf16>, vector<2x8x32xbf16>, vector<2x4x32xf32> -> vector<2x4x32xf32>
    "tpu.trace_stop"() : () -> ()
    %3 = arith.extf %0 : vector<2x4x8xbf16> to vector<2x4x8xf32>
    %cst_5 = arith.constant dense<0.000000e+00> : vector<2x4xf32>
    %4 = vector.multi_reduction <add>, %3, %cst_5 [2] : vector<2x4x8xf32> to vector<2x4xf32>
    %5 = vector.shape_cast %4 : vector<2x4xf32> to vector<2x4x1xf32>
    %cst_6 = arith.constant 1.000000e+00 : f32
    %6 = vector.broadcast %cst_6 : f32 to vector<2x4x1xf32>
    %7 = arith.maximumf %5, %6 : vector<2x4x1xf32>
    %8 = math.rsqrt %7 : vector<2x4x1xf32>
    %9 = vector.broadcast %8 : vector<2x4x1xf32> to vector<2x4x32xf32>
    %10 = arith.mulf %2, %9 : vector<2x4x32xf32>
    %11 = vector.shape_cast %10 : vector<2x4x32xf32> to vector<8x32xf32>
    %12 = arith.truncf %11 : vector<8x32xf32> to vector<8x32xbf16>
    %c0_7 = arith.constant 0 : index
    %c0_8 = arith.constant 0 : index
    %13 = vector.load %arg3[%c0_7, %c0_8] : memref<32x32xbf16, #tpu.memory_space<vmem>>, vector<32x32xbf16>
    %cst_9 = arith.constant dense<0.000000e+00> : vector<8x32xf32>
    %14 = tpu.matmul %12, %13, %cst_9 {dimension_numbers = #tpu.dot_dimension_numbers<[1], [0], [0], [1], [0, 0, 1, 1], [], []>} : vector<8x32xbf16>, vector<32x32xbf16>, vector<8x32xf32> -> vector<8x32xf32>
    %c0_10 = arith.constant 0 : index
    %c0_11 = arith.constant 0 : index
    %15 = vector.load %arg4[%c0_10, %c0_11] : memref<1x32xf32, #tpu.memory_space<vmem>>, vector<1x32xf32>
    %16 = vector.broadcast %15 : vector<1x32xf32> to vector<8x32xf32>
    %17 = arith.addf %14, %16 : vector<8x32xf32>
    %cst_12 = arith.constant 0.000000e+00 : f32
    %18 = vector.broadcast %cst_12 : f32 to vector<8x32xf32>
    %19 = arith.maximumf %17, %18 : vector<8x32xf32>
    %20 = arith.truncf %19 : vector<8x32xf32> to vector<8x32xbf16>
    %c0_13 = arith.constant 0 : index
    %c0_14 = arith.constant 0 : index
    %21 = vector.load %arg5[%c0_13, %c0_14] : memref<32x32xbf16, #tpu.memory_space<vmem>>, vector<32x32xbf16>
    %cst_15 = arith.constant dense<0.000000e+00> : vector<8x32xf32>
    %22 = tpu.matmul %20, %21, %cst_15 {dimension_numbers = #tpu.dot_dimension_numbers<[1], [0], [0], [1], [0, 0, 1, 1], [], []>} : vector<8x32xbf16>, vector<32x32xbf16>, vector<8x32xf32> -> vector<8x32xf32>
    %c0_16 = arith.constant 0 : index
    %c0_17 = arith.constant 0 : index
    %23 = vector.load %arg6[%c0_16, %c0_17] : memref<1x32xf32, #tpu.memory_space<vmem>>, vector<1x32xf32>
    %24 = vector.broadcast %23 : vector<1x32xf32> to vector<8x32xf32>
    %25 = arith.addf %22, %24 : vector<8x32xf32>
    %26 = vector.shape_cast %25 : vector<8x32xf32> to vector<2x4x32xf32>
    %c0_18 = arith.constant 0 : index
    %c0_19 = arith.constant 0 : index
    %c0_20 = arith.constant 0 : index
    %27 = vector.load %arg7[%c0_18, %c0_19, %c0_20] : memref<2x4x32xf32, #tpu.memory_space<vmem>>, vector<2x4x32xf32>
    tpu.vector_store %arg7[%c0_18, %c0_19, %c0_20], %26 {strides = array<i32>} : memref<2x4x32xf32, #tpu.memory_space<vmem>>, vector<2x4x32xf32>,
    return
  }
  func.func @transform_0(%arg0: i32) -> (i32, i32, i32) {
    %c0_i32 = arith.constant 0 : i32
    %c0_i32_0 = arith.constant 0 : i32
    %c0_i32_1 = arith.constant 0 : i32
    return %arg0, %c0_i32, %c0_i32_0 : i32, i32, i32
  }
  func.func @transform_1(%arg0: i32) -> (i32, i32, i32) {
    %c0_i32 = arith.constant 0 : i32
    %c0_i32_0 = arith.constant 0 : i32
    %c0_i32_1 = arith.constant 0 : i32
    return %arg0, %c0_i32, %c0_i32_0 : i32, i32, i32
  }
  func.func @transform_2(%arg0: i32) -> (i32, i32) {
    %c0_i32 = arith.constant 0 : i32
    %c0_i32_0 = arith.constant 0 : i32
    %c0_i32_1 = arith.constant 0 : i32
    return %c0_i32, %c0_i32_0 : i32, i32
  }
  func.func @transform_3(%arg0: i32) -> (i32, i32) {
    %c0_i32 = arith.constant 0 : i32
    %c0_i32_0 = arith.constant 0 : i32
    %c0_i32_1 = arith.constant 0 : i32
    return %c0_i32, %c0_i32_0 : i32, i32
  }
  func.func @transform_4(%arg0: i32) -> (i32, i32) {
    %c0_i32 = arith.constant 0 : i32
    %c0_i32_0 = arith.constant 0 : i32
    %c0_i32_1 = arith.constant 0 : i32
    return %c0_i32, %c0_i32_0 : i32, i32
  }
  func.func @transform_5(%arg0: i32) -> (i32, i32) {
    %c0_i32 = arith.constant 0 : i32
    %c0_i32_0 = arith.constant 0 : i32
    %c0_i32_1 = arith.constant 0 : i32
    return %c0_i32, %c0_i32_0 : i32, i32
  }
  func.func @transform_6(%arg0: i32) -> (i32, i32, i32) {
    %c0_i32 = arith.constant 0 : i32
    %c0_i32_0 = arith.constant 0 : i32
    %c0_i32_1 = arith.constant 0 : i32
    return %arg0, %c0_i32, %c0_i32_0 : i32, i32, i32
  }
}

</mosaic_0001>

<bundles_post_ra>
// kernel: tpu_custom_call.1
= control target key start
LH: loop header
LB: loop body
LE: loop exit
PB: predicated region body
PF: predicated region fallthrough
CT: control target
= control target key end

     0   :  { %11 = vsyncpa [#allocation3], 0  ;;  %s621_s0 = inlined_call_operand.hbm [shape: bf16[2,4,8], index: 0, kind: input, shape index: {}]   ;;  %s622_s1 = inlined_call_operand.hbm [shape: bf16[2,16,32], index: 1, kind: input, shape index: {}]   ;;  %s623_s2 = inlined_call_operand.hbm [shape: bf16[32,32], index: 2, kind: input, shape index: {}]   ;;  %s624_s3 = inlined_call_operand.vmem [shape: f32[1,32], index: 3, kind: input, shape index: {}]   ;;  %s625_s4 = inlined_call_operand.hbm [shape: bf16[32,32], index: 4, kind: input, shape index: {}]   ;;  %s626_s5 = inlined_call_operand.vmem [shape: f32[1,32], index: 5, kind: input, shape index: {}]   ;;  %s627_s6 = inlined_call_operand.hbm [shape: f32[2,4,32], index: 6, kind: output, shape index: {}]  }
   0x1   :  { %12 = vsyncpa [#allocation6], 0 }
   0x2   :  { %13 = vsyncpa [#allocation9], 0 }
   0x3   :  { %14 = vsyncpa [#allocation4], 0  ;;  %s534_s21 = smov [#allocation5]  }
   0x4   :  { %s32_s22 = sshll.u32 %s534_s21, 4  ;;  %s33_s22 = int_to_ptr.vmem [resolvable:$true] %s32_s22 }
   0x5   :  { %s434_s23 = scalar_lea.vmem %s33_s22, 128  ;;  %p439_p1 = scmp.lt.s32.totalorder %s33_s22, %s33_s22 }
   0x6   :  { %p435_p0 = scmp.ne.s32.totalorder %s33_s22, %s434_s23  ;;  %p440_p2 = scmp.lt.s32.totalorder %s434_s23, %s434_s23 }
   0x8   :  { %p441_p3 = por %p440_p2, %p439_p1 }
   0xa   :  { %p442_p4 = pnand %p441_p3, %p435_p0 }
   0xc   :  { %445 = shalt.err (!%p442_p4)
}
   0xd   :  { %s535_s24 = smov 128   ;;  %s536_s25 = smov 64  }
   0xe   :  { %s537_s26 = smov 4   ;;  %s538_s29 = smov [#allocation2]  }
   0xf   :  { %38 = dma.hbm_to_vmem [thread:$0]  %s622_s1, 128, %s33_s22, [#allocation6], %s535_s24, %s536_s25, %s537_s26  }
  0x10   :  { %s20_s30 = sshll.u32 %s538_s29, 4  ;;  %s21_s30 = int_to_ptr.vmem [resolvable:$true] %s20_s30 }
  0x11   :  { %s454_s7 = scalar_lea.vmem %s21_s30, 64  ;;  %p459_p6 = scmp.lt.s32.totalorder %s21_s30, %s21_s30 }
  0x12   :  { %p455_p5 = scmp.ne.s32.totalorder %s21_s30, %s454_s7  ;;  %p460_p7 = scmp.lt.s32.totalorder %s454_s7, %s454_s7 }
  0x14   :  { %p461_p8 = por %p460_p7, %p459_p6 }
  0x16   :  { %p462_p9 = pnand %p461_p8, %p455_p5 }
  0x18   :  { %465 = shalt.err (!%p462_p9)
}
  0x19   :  { %s539_s8 = smov 32   ;;  %s540_s9 = smov 2  }
  0x1a   :  { %26 = dma.hbm_to_vmem [thread:$0]  %s621_s0, 64, %s21_s30, [#allocation3], %s539_s8, %s539_s8, %s540_s9  }
  0x1b   :  { %s541_s12 = smov [#allocation7]   ;;  %s542_s1 = smov [#allocation8]  }
  0x1c   :  { %s44_s13 = sshll.u32 %s541_s12, 4  ;;  %s58_s14 = sshll.u32 %s542_s1, 4  ;;  %s45_s13 = int_to_ptr.vmem [resolvable:$true] %s44_s13  ;;  %s59_s14 = int_to_ptr.vmem [resolvable:$true] %s58_s14 }
  0x1d   :  { %s474_s15 = scalar_lea.vmem %s45_s13, 256  ;;  %p479_p11 = scmp.lt.s32.totalorder %s45_s13, %s45_s13 }
  0x1e   :  { %p475_p10 = scmp.ne.s32.totalorder %s45_s13, %s474_s15  ;;  %p480_p12 = scmp.lt.s32.totalorder %s474_s15, %s474_s15 }
  0x20   :  { %p481_p13 = por %p480_p12, %p479_p11 }
  0x22   :  { %p482_p0 = pnand %p481_p13, %p475_p10 }
  0x24   :  { %485 = shalt.err (!%p482_p0)
}
  0x25   :  { %50 = dma.hbm_to_vmem [thread:$0]  %s623_s2, 256, %s45_s13, [#allocation6], %s536_s25, %s536_s25, %s537_s26  }
  0x26   :  { %s494_s0 = scalar_lea.vmem %s59_s14, 256  ;;  %p499_p2 = scmp.lt.s32.totalorder %s59_s14, %s59_s14 }
  0x27   :  { %p495_p1 = scmp.ne.s32.totalorder %s59_s14, %s494_s0  ;;  %p500_p3 = scmp.lt.s32.totalorder %s494_s0, %s494_s0 }
  0x29   :  { %p501_p4 = por %p500_p3, %p499_p2 }
  0x2b   :  { %p502_p5 = pnand %p501_p4, %p495_p1 }
  0x2d   :  { %505 = shalt.err (!%p502_p5)
}
  0x2e   :  { %64 = dma.hbm_to_vmem [thread:$0]  %s625_s4, 256, %s59_s14, [#allocation9], %s536_s25, %s536_s25, %s537_s26  }
  0x2f   :  { %526 = dma.done.wait [#allocation3], 64  }
  0x30   :  { %527 = vsyncadd [#allocation3], 4294967232 }
  0x31   :  { %528 = dma.done.wait [#allocation6], 384  }
  0x32   :  { %529 = vsyncadd [#allocation6], 4294966912 }
  0x33   :  { %530 = dma.done.wait [#allocation9], 256  }
  0x34   :  { %531 = vsyncadd [#allocation9], 4294967040  ;;  %v543_v0 = vmov 0.0   ;;  %vm544_vm0 = vmmov 0   ;;  %vm88_vm1 = vcmask 1043456   ;;  %vm84_vm2 = vcmask 64512  }
  0x35   :  { %378 = vmatprep.subr.bf16.mxu0 %v543_v0  ;;  %384 = vmatprep.subr.bf16.mxu1 %v543_v0  ;;  %vm180_vm3 = vcmask 60416   ;;  %v82_v1 = vld [vmem:[#allocation5] sm:$0xf]  ;;  %v83_v2 = vld [vmem:[#allocation5 + $0x4] sm:$0xf]  ;;  %v418_v11 = vld [vmem:[#allocation7 + $0x8] sm:$0xff]  }
  0x36   :  { %380 = vmatprep.mubr.msk.bf16.mxu0 %vm544_vm0, %v543_v0  ;;  %386 = vmatprep.mubr.msk.bf16.mxu1 %vm544_vm0, %v543_v0  ;;  %v80_v3 = vld [vmem:[#allocation2] sm:$0x3]  ;;  %v90_v4 = vsel %vm88_vm1, %v82_v1, 0  ;;  %v136_v5 = vsel %vm88_vm1, %v83_v2, 0  ;;  %v81_v6 = vld [vmem:[#allocation2 + $0x2] sm:$0x3] }
  0x37   :  { %v178_v7 = vunpack.c.l.bf16 %v80_v3  ;;  %379 = vmatpush3.bf16.msra.mxu0 %v90_v4  ;;  %385 = vmatpush3.bf16.msra.mxu1 %v136_v5  ;;  %v179_v8 = vunpack.c.l.bf16 %v81_v6  ;;  %v419_v12 = vld [vmem:[#allocation7] sm:$0xff]   ;;  %v420_v13 = vld [vmem:[#allocation8 + $0x8] sm:$0xff]   ;;  %vm221_vm4 = vcmask 261120   ;;  %v421_v32 = vld [vmem:[#allocation8] sm:$0xff]   ;;  %vm336_vm5 = vcmask 257024   ;;  %s545_s22 = smov [#allocation10]  }
  0x38   :  { %390 = vmatprep.subr.bf16.mxu0 %v543_v0  ;;  %398 = vmatprep.subr.bf16.mxu1 %v543_v0  ;;  %v360_v33 = vld [vmem:[%s624_s3] ss:$0 sm:$0xff]  ;;  %s344_s23 = sshll.u32 %s545_s22, 4  ;;  %s345_s23 = int_to_ptr.vmem [resolvable:$true] %s344_s23 }
  0x39   :  { %v181_v9 = vsel %vm180_vm3, %v178_v7, 0.0  ;;  %v184_v10 = vsel %vm180_vm3, %v179_v8, 0.0  ;;  %v364_v41 = vld [vmem:[%s626_s5] ss:$0 sm:$0xff]  ;;  %s506_s3 = scalar_lea.vmem %s345_s23, 128  ;;  %p511_p7 = scmp.lt.s32.totalorder %s345_s23, %s345_s23 }
  0x3a   :  { %182 = vadd.xlane.f32.xlu0 %v181_v9  ;;  %381 = vmatmul.mubr.msk.bf16.vlgmr.msra.gmra.mxu0 %vm84_vm2, %v80_v3  ;;  %p507_p6 = scmp.ne.s32.totalorder %s345_s23, %s506_s3  ;;  %p512_p8 = scmp.lt.s32.totalorder %s506_s3, %s506_s3 }
  0x3b   :  { %387 = vmatmul.mubr.msk.bf16.vlgmr.msra.gmra.mxu1 %vm84_vm2, %v81_v6  ;;  %394 = vmatprep.mubr.msk.bf16.mxu0 %vm544_vm0, %v543_v0 }
  0x3c   :  { %402 = vmatprep.mubr.msk.bf16.mxu1 %vm544_vm0, %v543_v0  ;;  %391 = vmatpush3.bf16.msra.mxu0 %v418_v11  ;;  %p513_p9 = por %p512_p8, %p511_p7 }
  0x3d   :  { %392 = vmatprep.subr.bf16.mxu0 %v543_v0  ;;  %399 = vmatpush3.bf16.msra.mxu1 %v420_v13 }
  0x3e   :  { %185 = vadd.xlane.f32.xlu0 %v184_v10  ;;  %400 = vmatprep.subr.bf16.mxu1 %v543_v0  ;;  %p514_p10 = pnand %p513_p9, %p507_p6 }
  0x40   :  { %393 = vmatpush3.bf16.msra.mxu0 %v419_v12 }
  0x41   :  { %401 = vmatpush3.bf16.msra.mxu1 %v421_v32 }
  0xc3   :  { %v183_v14 = vpop.xlane.xlu0 %182 }
  0xc4   :  { %v187_v17 = vmax.f32 %v183_v14, 1.0 }
  0xc7   :  { %v186_v15 = vpop.xlane.xlu0 %185 }
  0xc8   :  { %v188_v16 = vmax.f32 %v186_v15, 1.0 }
  0xca   :  { %422 = vrsqrt.f32 %v188_v16 }
  0xcb   :  { %424 = vrsqrt.f32 %v187_v17 }
  0xd7   :  { %v423_v18 = vpop.eup %422 }
  0xd8   :  { %v425_v19 = vpop.eup %424 }
  0xfa   :  { %v126_v20 = vpop.f32.mrf.mxu0 }
  0xfb   :  { %v172_v21 = vpop.f32.mrf.mxu1  ;;  %v191_v22 = vmul.f32 %v425_v19, %v126_v20 }
  0xfc   :  { %v192_v23 = vmul.f32 %v423_v18, %v172_v21  ;;  %v382_v24 = vpop.f32.mrf.mxu0 }
  0xfd   :  { %v388_v25 = vpop.f32.mrf.mxu1 }
  0xfe   :  { %v195_v26 = vcombine.low %v191_v22, %v192_v23  ;;  %v129_v27 = vpop.f32.mrf.mxu0 }
  0xff   :  { %v175_v28 = vpop.f32.mrf.mxu1 }
 0x100   :  { %v197_v29 = vpack.c.bf16 %v195_v26, %v195_v26  ;;  %v383_v30 = vpop.f32.mrf.mxu0 }
 0x101   :  { %v389_v31 = vpop.f32.mrf.mxu1 }
 0x102   :  { %395 = vmatmul.mubr.msk.bf16.vlgmr.msra.gmra.mxu0 %vm221_vm4, %v197_v29 }
 0x1c2   :  { %v259_v34 = vpop.f32.mrf.mxu0 }
 0x1c3   :  { %v260_v35 = vadd.f32 %v360_v33, %v259_v34 }
 0x1c4   :  { %v396_v36 = vpop.f32.mrf.mxu0 }
 0x1c5   :  { %v265_v37 = vmax.f32 %v260_v35, 0.0 }
 0x1c6   :  { %v262_v38 = vpop.f32.mrf.mxu0 }
 0x1c7   :  { %v266_v39 = vpack.c.bf16 %v265_v37, %v265_v37 }
 0x1c8   :  { %v397_v40 = vpop.f32.mrf.mxu0 }
 0x1c9   :  { %403 = vmatmul.mubr.msk.bf16.vlgmr.msra.gmra.mxu1 %vm221_vm4, %v266_v39 }
 0x289   :  { %v327_v42 = vpop.f32.mrf.mxu1 }
 0x28a   :  { %v328_v43 = vadd.f32 %v364_v41, %v327_v42 }
 0x28b   :  { %v404_v44 = vpop.f32.mrf.mxu1 }
 0x28c   :  { %v334_v45 = vcombine.high %v328_v43, %v328_v43  ;;  %337 = vst.msk [vmem:[#allocation10] sm:$0xf] %vm336_vm5, %v328_v43 }
 0x28d   :  { %v330_v46 = vpop.f32.mrf.mxu1 }
 0x28e   :  { %338 = vst.msk [vmem:[#allocation10 + $0x4] sm:$0xf] %vm336_vm5, %v334_v45 }
 0x28f   :  { %v405_v47 = vpop.f32.mrf.mxu1 }
 0x290   :  { %517 = shalt.err (!%p514_p10)
}
 0x291   :  { %350 = dma.vmem_to_hbm [thread:$0]  %s345_s23, 128, %s627_s6, [#allocation4], %s536_s25, %s536_s25, %s537_s26  }
 0x292   :  { %532 = dma.done.wait [#allocation4], 128  }
 0x293   :  { %533 = vsyncadd [#allocation4], 4294967168 }
 0x294   :  { %354 = vsyncpa [#allocation3], 1 }
 0x295   :  { %355 = vsyncpa [#allocation6], 1 }
 0x296   :  { %356 = vsyncpa [#allocation9], 1 }
 0x297   :  { %357 = vsyncpa [#allocation4], 1 }

</bundles_post_ra>
